<compile_context>
chip_gen: v7x
topology: tpu7x:2x2x1
jax: 0.10.0
libtpu: 0.0.40
codegen_flags: <defaults>
</compile_context>

<pallas_src>
import functools

import numpy as np
import jax
import jax.numpy as jnp
from jax import lax
from jax.experimental import pallas as pl
from jax.experimental.pallas import tpu as pltpu


# ------------------------------ Pallas kernel ------------------------------ #

def _band_matrix(t_in, t_out, ks, offset):
    """0/1 matrix B with B[j, w] = 1 iff w // ks == j + offset.

    x @ B gives x[:, w//ks - offset] with automatic zeros at the boundaries.
    Built in-kernel from iota: no HBM traffic, no double-buffered VMEM copy.
    """
    col = lax.broadcasted_iota(jnp.int32, (t_in, t_out), 1)
    row = lax.broadcasted_iota(jnp.int32, (t_in, t_out), 0)
    tgt = (row + offset) * ks
    return jnp.logical_and(col >= tgt, col < tgt + ks).astype(jnp.float32)


def _fused_kernel(x_ref, s_ref, *refs, stage_cfg):
    """Fused [ConvTranspose2d(1,1,(3,2ks),pad=(1,ks//2),stride=(1,ks)) + LeakyReLU(0.4)] x stages.

    x_ref     : (1, F, T0)     VMEM, one batch element
    s_ref     : (2, F, F)      VMEM, height-shift matrices (picks rows h+1 / h-1)
    refs[:-1] : per-stage (10, 1, T_out) VMEM weight rows:
                rows 3*kh+{0,1,2} = coefficient on x[j], x[j-1], x[j+1] for
                height tap kh; row 9 = bias (broadcast).  Boundary terms
                (j == 0 / j == T_in-1, which is also where a circular roll
                wraps) are already zeroed in these rows.
    refs[-1]  : (1, F, T_final) VMEM output (lane-dense, full width)
    """
    cw_refs = refs[:-1]
    o_ref = refs[-1]

    x = x_ref[0]                       # (F, T0) f32
    s_up = s_ref[0]                    # (F, F): (s_up @ t)[h] = t[h+1]
    s_dn = s_ref[1]                    # (F, F): (s_dn @ t)[h] = t[h-1]

    for idx, (ks, t_in, t_out) in enumerate(stage_cfg):
        cw = cw_refs[idx]

        # ---- time upsample: x_rep[:, w] = x[:, w // ks]  (one MXU matmul) ----
        x_rep = jnp.dot(x, _band_matrix(t_in, t_out, ks, 0),
                        preferred_element_type=jnp.float32)          # (F, t_out)

        # +-1 input-time neighbours of the banded transform.
        if t_out % 128 == 0:
            # lane-aligned: cheap XLU rotations (wrap regions are zeroed by the
            # weight rows).
            x_prev = pltpu.roll(x_rep, ks, axis=1)          # -> x[:, w//ks - 1]
            x_next = pltpu.roll(x_rep, t_out - ks, axis=1)  # -> x[:, w//ks + 1]
        else:
            # 32-lane intermediate (stage 1): fall back to 0/1 matmuls.
            x_prev = jnp.dot(x, _band_matrix(t_in, t_out, ks, 1),
                             preferred_element_type=jnp.float32)
            x_next = jnp.dot(x, _band_matrix(t_in, t_out, ks, -1),
                             preferred_element_type=jnp.float32)

        # ---- banded width transform: per-lane periodic weight rows (VPU) ----
        taps = []
        for kh in range(3):
            taps.append(x_rep * cw[3 * kh + 0]
                        + x_prev * cw[3 * kh + 1]
                        + x_next * cw[3 * kh + 2])
        t_up, t_mid, t_dn = taps        # width transforms with W[0], W[1], W[2]

        # ---- height taps (kernel 3, pad 1): out[h] = T0(x)[h+1] + T1(x)[h] + T2(x)[h-1]
        up = jnp.dot(s_up, t_up, preferred_element_type=jnp.float32)
        dn = jnp.dot(s_dn, t_dn, preferred_element_type=jnp.float32)

        y = up + t_mid + dn + cw[9]                     # + bias row
        x = jnp.where(y >= 0.0, y, 0.4 * y)             # LeakyReLU(0.4)

    o_ref[0] = x


# -------------------------------- glue (JAX) -------------------------------- #

def _stage_weight_rows(w_eff, bias, ks, t_in):
    """(10, 1, t_out) per-output-lane weight rows for one ConvTranspose stage.

    For output lane w (p = w % ks, j = w // ks, pad = ks // 2):
      coeff on x[j]   : W[kh, p + pad]                              (row 3*kh+0)
      coeff on x[j-1] : W[kh, p + ks + pad] if p < pad and j > 0    (row 3*kh+1)
      coeff on x[j+1] : W[kh, p - pad]      if p >= pad and j < t_in-1 (row 3*kh+2)
    Row 9 is the bias broadcast over all lanes.
    """
    t_out = t_in * ks
    half = ks // 2
    w = jnp.arange(t_out)
    p = w % ks
    j = w // ks
    rows = []
    for kh in range(3):
        wk = w_eff[kh].astype(jnp.float32)                       # (2*ks,)
        c0 = wk[p + half]
        cm = jnp.where((p < half) & (j >= 1),
                       wk[jnp.clip(p + ks + half, 0, 2 * ks - 1)], 0.0)
        cp = jnp.where((p >= half) & (j <= t_in - 2),
                       wk[jnp.clip(p - half, 0, 2 * ks - 1)], 0.0)
        rows += [c0, cm, cp]
    rows.append(jnp.full((t_out,), bias, jnp.float32))
    return jnp.stack(rows, axis=0).reshape(10, 1, t_out)


def _height_shift_matrices(f_bins):
    r = np.arange(f_bins)
    s_up = (r[None, :] == r[:, None] + 1).astype(np.float32)     # picks x[h+1]
    s_dn = (r[None, :] == r[:, None] - 1).astype(np.float32)     # picks x[h-1]
    return jnp.asarray(np.stack([s_up, s_dn], axis=0))           # (2, F, F)


@functools.partial(jax.jit, static_argnames=("width", "kernel_sizes"))
def stft_upsample(c, *, width, kernel_sizes, weights, biases):
    """weights[i]: (3, 2*ks_i) effective (weight-normed) kernels; biases[i]: scalar."""
    x = c.astype(jnp.float32)
    b, f_bins, t0 = x.shape

    stage_cfg = []
    cw_list = []
    t_in = t0
    for ks, w_eff, bias in zip(kernel_sizes, weights, biases):
        # TODO(synk): odd kernel sizes (output length T*ks + 1) are not handled
        # by this fused kernel; the module is used with even (power-of-two) ks.
        assert ks % 2 == 0, "even ConvTranspose kernel sizes assumed"
        t_out = t_in * ks
        cw_list.append(_stage_weight_rows(w_eff, bias, ks, t_in))
        stage_cfg.append((ks, t_in, t_out))
        t_in = t_out
    t_final = t_in

    s_mats = _height_shift_matrices(f_bins)
    kernel = functools.partial(_fused_kernel, stage_cfg=tuple(stage_cfg))

    in_specs = [
        pl.BlockSpec((1, f_bins, t0), lambda i: (i, 0, 0)),
        pl.BlockSpec((2, f_bins, f_bins), lambda i: (0, 0, 0)),
    ]
    for (_, _, t_out) in stage_cfg:
        in_specs.append(pl.BlockSpec((10, 1, t_out), lambda i: (0, 0, 0)))

    # NOTE: at production T one would add a T_out tile axis ("parallel") and
    # window the input accordingly; at these sizes one block per batch element
    # is already a handful of vregs.
    y = pl.pallas_call(
        kernel,
        out_shape=jax.ShapeDtypeStruct((b, f_bins, t_final), jnp.float32),
        grid_spec=pltpu.PrefetchScalarGridSpec(
            num_scalar_prefetch=0,
            grid=(b,),
            in_specs=in_specs,
            out_specs=pl.BlockSpec((1, f_bins, t_final), lambda i: (i, 0, 0)),
        ),
        compiler_params=pltpu.CompilerParams(dimension_semantics=("parallel",)),
    )(x, s_mats, *cw_list)

    # Centre crop done by XLA so the kernel's only HBM store stays 128-lane
    # dense (the crop is a ~15 KB copy here).
    si = (t_final - width) // 2
    return y[..., si:si + width]


# --------------------------- pure-JAX reference ----------------------------- #

def _ref_stage(x, w_eff, bias, ks):
    # ConvTranspose2d == conv with lhs_dilation=stride, padding=k-1-p, flipped kernel.
    lhs = x[:, None, :, :].astype(jnp.float32)                     # NCHW
    rhs = w_eff[::-1, ::-1][None, None].astype(jnp.float32)        # OIHW, flipped
    qh = 3 - 1 - 1
    qw = 2 * ks - 1 - ks // 2
    y = lax.conv_general_dilated(
        lhs, rhs, window_strides=(1, 1),
        padding=[(qh, qh), (qw, qw)],
        lhs_dilation=(1, ks), rhs_dilation=(1, 1),
        dimension_numbers=("NCHW", "OIHW", "NCHW"))
    y = y[:, 0] + bias
    return jnp.where(y >= 0.0, y, 0.4 * y)


def stft_upsample_ref(c, width, params):
    x = c.astype(jnp.float32)
    for (w_eff, bias, ks) in params:
        x = _ref_stage(x, w_eff, bias, ks)
    si = (x.shape[-1] - width) // 2
    return x[..., si:si + width]


# ----------------------------------- main ----------------------------------- #

if __name__ == "__main__":
    key = jax.random.PRNGKey(0)
    B, F_BINS, T = 2, 16, 8
    kernel_sizes = (4, 4)          # time upsampling 4 * 4 = 16 -> T_final = 128
    width = 120

    # Deterministic parameters.  weight_norm effective weight W = g * v / ||v||
    # is computed in glue (kaiming_normal_ on the wrapped module has no effect
    # on the forward since weight_g/weight_v are recomputed on forward).
    weights, biases, params = [], [], []
    for i, ks in enumerate(kernel_sizes):
        key, kv, kb = jax.random.split(key, 3)
        fan_in = 1 * 3 * (2 * ks)
        v = jax.random.normal(kv, (3, 2 * ks), jnp.float32) * np.sqrt(2.0 / fan_in)
        g = jnp.float32(1.0 + 0.25 * i)
        w_eff = g * v / jnp.linalg.norm(v)
        bias = jax.random.normal(kb, (), jnp.float32) * 0.05
        weights.append(w_eff)
        biases.append(bias)
        params.append((w_eff, bias, ks))

    key, kc = jax.random.split(key)
    c = jax.random.normal(kc, (B, F_BINS, T), jnp.float32)

    out = stft_upsample(c, width=width, kernel_sizes=kernel_sizes,
                        weights=tuple(weights), biases=tuple(biases))
    out = jax.block_until_ready(out)

    ref = jax.block_until_ready(stft_upsample_ref(c, width, params))

    assert out.shape == (B, F_BINS, width), out.shape
    np.testing.assert_allclose(np.asarray(out), np.asarray(ref), rtol=1e-4, atol=1e-4)

    print("KERNEL_OK")
</pallas_src>

<mosaic_0001>
module attributes {stable_mosaic.version = 11 : i64} {
  func.func @_fused_kernel(%arg0: i32, %arg1: memref<1x16x8xf32, #tpu.memory_space<vmem>>, %arg2: memref<2x16x16xf32, #tpu.memory_space<vmem>>, %arg3: memref<10x1x32xf32, #tpu.memory_space<vmem>>, %arg4: memref<10x1x128xf32, #tpu.memory_space<vmem>>, %arg5: memref<1x16x128xf32, #tpu.memory_space<vmem>>) attributes {dimension_semantics = [#tpu.dimension_semantics<parallel>], iteration_bounds = array<i64: 2>, scalar_prefetch = 0 : i64, scratch_operands = 0 : i64, tpu.core_type = #tpu.core_type<tc>, window_params = [{transform_indices = @transform_0, window_bounds = array<i64: 1, 16, 8>}, {pipeline_mode = #tpu.pipeline_mode<synchronous>, transform_indices = @transform_1, window_bounds = array<i64: 2, 16, 16>}, {pipeline_mode = #tpu.pipeline_mode<synchronous>, transform_indices = @transform_2, window_bounds = array<i64: 10, 1, 32>}, {pipeline_mode = #tpu.pipeline_mode<synchronous>, transform_indices = @transform_3, window_bounds = array<i64: 10, 1, 128>}, {transform_indices = @transform_4, window_bounds = array<i64: 1, 16, 128>}]} {
    %c0 = arith.constant 0 : index
    %c0_0 = arith.constant 0 : index
    %c0_1 = arith.constant 0 : index
    %0 = vector.load %arg1[%c0, %c0_0, %c0_1] : memref<1x16x8xf32, #tpu.memory_space<vmem>>, vector<1x16x8xf32>
    %1 = vector.shape_cast %0 : vector<1x16x8xf32> to vector<16x8xf32>
    %c0_2 = arith.constant 0 : index
    %c0_3 = arith.constant 0 : index
    %c0_4 = arith.constant 0 : index
    %2 = vector.load %arg2[%c0_2, %c0_3, %c0_4] : memref<2x16x16xf32, #tpu.memory_space<vmem>>, vector<1x16x16xf32>
    %3 = vector.shape_cast %2 : vector<1x16x16xf32> to vector<16x16xf32>
    %c1 = arith.constant 1 : index
    %c0_5 = arith.constant 0 : index
    %c0_6 = arith.constant 0 : index
    %4 = vector.load %arg2[%c1, %c0_5, %c0_6] : memref<2x16x16xf32, #tpu.memory_space<vmem>>, vector<1x16x16xf32>
    %5 = vector.shape_cast %4 : vector<1x16x16xf32> to vector<16x16xf32>
    %6 = tpu.iota {dimensions = array<i32: 1>} : vector<8x32xi32>
    %7 = tpu.iota {dimensions = array<i32: 0>} : vector<8x32xi32>
    %c0_i32 = arith.constant 0 : i32
    %8 = vector.broadcast %c0_i32 : i32 to vector<8x32xi32>
    %9 = arith.addi %7, %8 : vector<8x32xi32>
    %c4_i32 = arith.constant 4 : i32
    %10 = vector.broadcast %c4_i32 : i32 to vector<8x32xi32>
    %11 = arith.muli %9, %10 : vector<8x32xi32>
    %12 = arith.cmpi sge, %6, %11 : vector<8x32xi32>
    %c4_i32_7 = arith.constant 4 : i32
    %13 = vector.broadcast %c4_i32_7 : i32 to vector<8x32xi32>
    %14 = arith.addi %11, %13 : vector<8x32xi32>
    %15 = arith.cmpi slt, %6, %14 : vector<8x32xi32>
    %16 = arith.andi %12, %15 : vector<8x32xi1>
    %17 = arith.extui %16 : vector<8x32xi1> to vector<8x32xi32>
    %18 = arith.sitofp %17 : vector<8x32xi32> to vector<8x32xf32>
    %cst = arith.constant dense<0.000000e+00> : vector<16x32xf32>
    %19 = tpu.matmul %1, %18, %cst {dimension_numbers = #tpu.dot_dimension_numbers<[1], [0], [0], [1], [0, 0, 1, 1], [], []>} : vector<16x8xf32>, vector<8x32xf32>, vector<16x32xf32> -> vector<16x32xf32>
    %20 = tpu.iota {dimensions = array<i32: 1>} : vector<8x32xi32>
    %21 = tpu.iota {dimensions = array<i32: 0>} : vector<8x32xi32>
    %c1_i32 = arith.constant 1 : i32
    %22 = vector.broadcast %c1_i32 : i32 to vector<8x32xi32>
    %23 = arith.addi %21, %22 : vector<8x32xi32>
    %c4_i32_8 = arith.constant 4 : i32
    %24 = vector.broadcast %c4_i32_8 : i32 to vector<8x32xi32>
    %25 = arith.muli %23, %24 : vector<8x32xi32>
    %26 = arith.cmpi sge, %20, %25 : vector<8x32xi32>
    %c4_i32_9 = arith.constant 4 : i32
    %27 = vector.broadcast %c4_i32_9 : i32 to vector<8x32xi32>
    %28 = arith.addi %25, %27 : vector<8x32xi32>
    %29 = arith.cmpi slt, %20, %28 : vector<8x32xi32>
    %30 = arith.andi %26, %29 : vector<8x32xi1>
    %31 = arith.extui %30 : vector<8x32xi1> to vector<8x32xi32>
    %32 = arith.sitofp %31 : vector<8x32xi32> to vector<8x32xf32>
    %cst_10 = arith.constant dense<0.000000e+00> : vector<16x32xf32>
    %33 = tpu.matmul %1, %32, %cst_10 {dimension_numbers = #tpu.dot_dimension_numbers<[1], [0], [0], [1], [0, 0, 1, 1], [], []>} : vector<16x8xf32>, vector<8x32xf32>, vector<16x32xf32> -> vector<16x32xf32>
    %34 = tpu.iota {dimensions = array<i32: 1>} : vector<8x32xi32>
    %35 = tpu.iota {dimensions = array<i32: 0>} : vector<8x32xi32>
    %c-1_i32 = arith.constant -1 : i32
    %36 = vector.broadcast %c-1_i32 : i32 to vector<8x32xi32>
    %37 = arith.addi %35, %36 : vector<8x32xi32>
    %c4_i32_11 = arith.constant 4 : i32
    %38 = vector.broadcast %c4_i32_11 : i32 to vector<8x32xi32>
    %39 = arith.muli %37, %38 : vector<8x32xi32>
    %40 = arith.cmpi sge, %34, %39 : vector<8x32xi32>
    %c4_i32_12 = arith.constant 4 : i32
    %41 = vector.broadcast %c4_i32_12 : i32 to vector<8x32xi32>
    %42 = arith.addi %39, %41 : vector<8x32xi32>
    %43 = arith.cmpi slt, %34, %42 : vector<8x32xi32>
    %44 = arith.andi %40, %43 : vector<8x32xi1>
    %45 = arith.extui %44 : vector<8x32xi1> to vector<8x32xi32>
    %46 = arith.sitofp %45 : vector<8x32xi32> to vector<8x32xf32>
    %cst_13 = arith.constant dense<0.000000e+00> : vector<16x32xf32>
    %47 = tpu.matmul %1, %46, %cst_13 {dimension_numbers = #tpu.dot_dimension_numbers<[1], [0], [0], [1], [0, 0, 1, 1], [], []>} : vector<16x8xf32>, vector<8x32xf32>, vector<16x32xf32> -> vector<16x32xf32>
    %c0_14 = arith.constant 0 : index
    %c0_15 = arith.constant 0 : index
    %c0_16 = arith.constant 0 : index
    %48 = vector.load %arg3[%c0_14, %c0_15, %c0_16] : memref<10x1x32xf32, #tpu.memory_space<vmem>>, vector<1x1x32xf32>
    %49 = vector.shape_cast %48 : vector<1x1x32xf32> to vector<1x32xf32>
    %50 = vector.broadcast %49 : vector<1x32xf32> to vector<16x32xf32>
    %51 = arith.mulf %19, %50 : vector<16x32xf32>
    %c1_17 = arith.constant 1 : index
    %c0_18 = arith.constant 0 : index
    %c0_19 = arith.constant 0 : index
    %52 = vector.load %arg3[%c1_17, %c0_18, %c0_19] : memref<10x1x32xf32, #tpu.memory_space<vmem>>, vector<1x1x32xf32>
    %53 = vector.shape_cast %52 : vector<1x1x32xf32> to vector<1x32xf32>
    %54 = vector.broadcast %53 : vector<1x32xf32> to vector<16x32xf32>
    %55 = arith.mulf %33, %54 : vector<16x32xf32>
    %56 = arith.addf %51, %55 : vector<16x32xf32>
    %c2 = arith.constant 2 : index
    %c0_20 = arith.constant 0 : index
    %c0_21 = arith.constant 0 : index
    %57 = vector.load %arg3[%c2, %c0_20, %c0_21] : memref<10x1x32xf32, #tpu.memory_space<vmem>>, vector<1x1x32xf32>
    %58 = vector.shape_cast %57 : vector<1x1x32xf32> to vector<1x32xf32>
    %59 = vector.broadcast %58 : vector<1x32xf32> to vector<16x32xf32>
    %60 = arith.mulf %47, %59 : vector<16x32xf32>
    %61 = arith.addf %56, %60 : vector<16x32xf32>
    %c3 = arith.constant 3 : index
    %c0_22 = arith.constant 0 : index
    %c0_23 = arith.constant 0 : index
    %62 = vector.load %arg3[%c3, %c0_22, %c0_23] : memref<10x1x32xf32, #tpu.memory_space<vmem>>, vector<1x1x32xf32>
    %63 = vector.shape_cast %62 : vector<1x1x32xf32> to vector<1x32xf32>
    %64 = vector.broadcast %63 : vector<1x32xf32> to vector<16x32xf32>
    %65 = arith.mulf %19, %64 : vector<16x32xf32>
    %c4 = arith.constant 4 : index
    %c0_24 = arith.constant 0 : index
    %c0_25 = arith.constant 0 : index
    %66 = vector.load %arg3[%c4, %c0_24, %c0_25] : memref<10x1x32xf32, #tpu.memory_space<vmem>>, vector<1x1x32xf32>
    %67 = vector.shape_cast %66 : vector<1x1x32xf32> to vector<1x32xf32>
    %68 = vector.broadcast %67 : vector<1x32xf32> to vector<16x32xf32>
    %69 = arith.mulf %33, %68 : vector<16x32xf32>
    %70 = arith.addf %65, %69 : vector<16x32xf32>
    %c5 = arith.constant 5 : index
    %c0_26 = arith.constant 0 : index
    %c0_27 = arith.constant 0 : index
    %71 = vector.load %arg3[%c5, %c0_26, %c0_27] : memref<10x1x32xf32, #tpu.memory_space<vmem>>, vector<1x1x32xf32>
    %72 = vector.shape_cast %71 : vector<1x1x32xf32> to vector<1x32xf32>
    %73 = vector.broadcast %72 : vector<1x32xf32> to vector<16x32xf32>
    %74 = arith.mulf %47, %73 : vector<16x32xf32>
    %75 = arith.addf %70, %74 : vector<16x32xf32>
    %c6 = arith.constant 6 : index
    %c0_28 = arith.constant 0 : index
    %c0_29 = arith.constant 0 : index
    %76 = vector.load %arg3[%c6, %c0_28, %c0_29] : memref<10x1x32xf32, #tpu.memory_space<vmem>>, vector<1x1x32xf32>
    %77 = vector.shape_cast %76 : vector<1x1x32xf32> to vector<1x32xf32>
    %78 = vector.broadcast %77 : vector<1x32xf32> to vector<16x32xf32>
    %79 = arith.mulf %19, %78 : vector<16x32xf32>
    %c7 = arith.constant 7 : index
    %c0_30 = arith.constant 0 : index
    %c0_31 = arith.constant 0 : index
    %80 = vector.load %arg3[%c7, %c0_30, %c0_31] : memref<10x1x32xf32, #tpu.memory_space<vmem>>, vector<1x1x32xf32>
    %81 = vector.shape_cast %80 : vector<1x1x32xf32> to vector<1x32xf32>
    %82 = vector.broadcast %81 : vector<1x32xf32> to vector<16x32xf32>
    %83 = arith.mulf %33, %82 : vector<16x32xf32>
    %84 = arith.addf %79, %83 : vector<16x32xf32>
    %c8 = arith.constant 8 : index
    %c0_32 = arith.constant 0 : index
    %c0_33 = arith.constant 0 : index
    %85 = vector.load %arg3[%c8, %c0_32, %c0_33] : memref<10x1x32xf32, #tpu.memory_space<vmem>>, vector<1x1x32xf32>
    %86 = vector.shape_cast %85 : vector<1x1x32xf32> to vector<1x32xf32>
    %87 = vector.broadcast %86 : vector<1x32xf32> to vector<16x32xf32>
    %88 = arith.mulf %47, %87 : vector<16x32xf32>
    %89 = arith.addf %84, %88 : vector<16x32xf32>
    %cst_34 = arith.constant dense<0.000000e+00> : vector<16x32xf32>
    %90 = tpu.matmul %3, %61, %cst_34 {dimension_numbers = #tpu.dot_dimension_numbers<[1], [0], [0], [1], [0, 0, 1, 1], [], []>} : vector<16x16xf32>, vector<16x32xf32>, vector<16x32xf32> -> vector<16x32xf32>
    %cst_35 = arith.constant dense<0.000000e+00> : vector<16x32xf32>
    %91 = tpu.matmul %5, %89, %cst_35 {dimension_numbers = #tpu.dot_dimension_numbers<[1], [0], [0], [1], [0, 0, 1, 1], [], []>} : vector<16x16xf32>, vector<16x32xf32>, vector<16x32xf32> -> vector<16x32xf32>
    %92 = arith.addf %90, %75 : vector<16x32xf32>
    %93 = arith.addf %92, %91 : vector<16x32xf32>
    %c9 = arith.constant 9 : index
    %c0_36 = arith.constant 0 : index
    %c0_37 = arith.constant 0 : index
    %94 = vector.load %arg3[%c9, %c0_36, %c0_37] : memref<10x1x32xf32, #tpu.memory_space<vmem>>, vector<1x1x32xf32>
    %95 = vector.shape_cast %94 : vector<1x1x32xf32> to vector<1x32xf32>
    %96 = vector.broadcast %95 : vector<1x32xf32> to vector<16x32xf32>
    %97 = arith.addf %93, %96 : vector<16x32xf32>
    %cst_38 = arith.constant 0.000000e+00 : f32
    %98 = vector.broadcast %cst_38 : f32 to vector<16x32xf32>
    %99 = arith.cmpf oge, %97, %98 : vector<16x32xf32>
    %cst_39 = arith.constant 4.000000e-01 : f32
    %100 = vector.broadcast %cst_39 : f32 to vector<16x32xf32>
    %101 = arith.mulf %100, %97 : vector<16x32xf32>
    %102 = arith.select %99, %97, %101 : vector<16x32xi1>, vector<16x32xf32>
    %103 = tpu.iota {dimensions = array<i32: 1>} : vector<32x128xi32>
    %104 = tpu.iota {dimensions = array<i32: 0>} : vector<32x128xi32>
    %c0_i32_40 = arith.constant 0 : i32
    %105 = vector.broadcast %c0_i32_40 : i32 to vector<32x128xi32>
    %106 = arith.addi %104, %105 : vector<32x128xi32>
    %c4_i32_41 = arith.constant 4 : i32
    %107 = vector.broadcast %c4_i32_41 : i32 to vector<32x128xi32>
    %108 = arith.muli %106, %107 : vector<32x128xi32>
    %109 = arith.cmpi sge, %103, %108 : vector<32x128xi32>
    %c4_i32_42 = arith.constant 4 : i32
    %110 = vector.broadcast %c4_i32_42 : i32 to vector<32x128xi32>
    %111 = arith.addi %108, %110 : vector<32x128xi32>
    %112 = arith.cmpi slt, %103, %111 : vector<32x128xi32>
    %113 = arith.andi %109, %112 : vector<32x128xi1>
    %114 = arith.extui %113 : vector<32x128xi1> to vector<32x128xi32>
    %115 = arith.sitofp %114 : vector<32x128xi32> to vector<32x128xf32>
    %cst_43 = arith.constant dense<0.000000e+00> : vector<16x128xf32>
    %116 = tpu.matmul %102, %115, %cst_43 {dimension_numbers = #tpu.dot_dimension_numbers<[1], [0], [0], [1], [0, 0, 1, 1], [], []>} : vector<16x32xf32>, vector<32x128xf32>, vector<16x128xf32> -> vector<16x128xf32>
    %c4_i32_44 = arith.constant 4 : i32
    %117 = tpu.dynamic_rotate %116 by %c4_i32_44 dim 1 : vector<16x128xf32>, i32 -> vector<16x128xf32>
    %c124_i32 = arith.constant 124 : i32
    %118 = tpu.dynamic_rotate %116 by %c124_i32 dim 1 : vector<16x128xf32>, i32 -> vector<16x128xf32>
    %c0_45 = arith.constant 0 : index
    %c0_46 = arith.constant 0 : index
    %c0_47 = arith.constant 0 : index
    %119 = vector.load %arg4[%c0_45, %c0_46, %c0_47] : memref<10x1x128xf32, #tpu.memory_space<vmem>>, vector<1x1x128xf32>
    %120 = vector.shape_cast %119 : vector<1x1x128xf32> to vector<1x128xf32>
    %121 = vector.broadcast %120 : vector<1x128xf32> to vector<16x128xf32>
    %122 = arith.mulf %116, %121 : vector<16x128xf32>
    %c1_48 = arith.constant 1 : index
    %c0_49 = arith.constant 0 : index
    %c0_50 = arith.constant 0 : index
    %123 = vector.load %arg4[%c1_48, %c0_49, %c0_50] : memref<10x1x128xf32, #tpu.memory_space<vmem>>, vector<1x1x128xf32>
    %124 = vector.shape_cast %123 : vector<1x1x128xf32> to vector<1x128xf32>
    %125 = vector.broadcast %124 : vector<1x128xf32> to vector<16x128xf32>
    %126 = arith.mulf %117, %125 : vector<16x128xf32>
    %127 = arith.addf %122, %126 : vector<16x128xf32>
    %c2_51 = arith.constant 2 : index
    %c0_52 = arith.constant 0 : index
    %c0_53 = arith.constant 0 : index
    %128 = vector.load %arg4[%c2_51, %c0_52, %c0_53] : memref<10x1x128xf32, #tpu.memory_space<vmem>>, vector<1x1x128xf32>
    %129 = vector.shape_cast %128 : vector<1x1x128xf32> to vector<1x128xf32>
    %130 = vector.broadcast %129 : vector<1x128xf32> to vector<16x128xf32>
    %131 = arith.mulf %118, %130 : vector<16x128xf32>
    %132 = arith.addf %127, %131 : vector<16x128xf32>
    %c3_54 = arith.constant 3 : index
    %c0_55 = arith.constant 0 : index
    %c0_56 = arith.constant 0 : index
    %133 = vector.load %arg4[%c3_54, %c0_55, %c0_56] : memref<10x1x128xf32, #tpu.memory_space<vmem>>, vector<1x1x128xf32>
    %134 = vector.shape_cast %133 : vector<1x1x128xf32> to vector<1x128xf32>
    %135 = vector.broadcast %134 : vector<1x128xf32> to vector<16x128xf32>
    %136 = arith.mulf %116, %135 : vector<16x128xf32>
    %c4_57 = arith.constant 4 : index
    %c0_58 = arith.constant 0 : index
    %c0_59 = arith.constant 0 : index
    %137 = vector.load %arg4[%c4_57, %c0_58, %c0_59] : memref<10x1x128xf32, #tpu.memory_space<vmem>>, vector<1x1x128xf32>
    %138 = vector.shape_cast %137 : vector<1x1x128xf32> to vector<1x128xf32>
    %139 = vector.broadcast %138 : vector<1x128xf32> to vector<16x128xf32>
    %140 = arith.mulf %117, %139 : vector<16x128xf32>
    %141 = arith.addf %136, %140 : vector<16x128xf32>
    %c5_60 = arith.constant 5 : index
    %c0_61 = arith.constant 0 : index
    %c0_62 = arith.constant 0 : index
    %142 = vector.load %arg4[%c5_60, %c0_61, %c0_62] : memref<10x1x128xf32, #tpu.memory_space<vmem>>, vector<1x1x128xf32>
    %143 = vector.shape_cast %142 : vector<1x1x128xf32> to vector<1x128xf32>
    %144 = vector.broadcast %143 : vector<1x128xf32> to vector<16x128xf32>
    %145 = arith.mulf %118, %144 : vector<16x128xf32>
    %146 = arith.addf %141, %145 : vector<16x128xf32>
    %c6_63 = arith.constant 6 : index
    %c0_64 = arith.constant 0 : index
    %c0_65 = arith.constant 0 : index
    %147 = vector.load %arg4[%c6_63, %c0_64, %c0_65] : memref<10x1x128xf32, #tpu.memory_space<vmem>>, vector<1x1x128xf32>
    %148 = vector.shape_cast %147 : vector<1x1x128xf32> to vector<1x128xf32>
    %149 = vector.broadcast %148 : vector<1x128xf32> to vector<16x128xf32>
    %150 = arith.mulf %116, %149 : vector<16x128xf32>
    %c7_66 = arith.constant 7 : index
    %c0_67 = arith.constant 0 : index
    %c0_68 = arith.constant 0 : index
    %151 = vector.load %arg4[%c7_66, %c0_67, %c0_68] : memref<10x1x128xf32, #tpu.memory_space<vmem>>, vector<1x1x128xf32>
    %152 = vector.shape_cast %151 : vector<1x1x128xf32> to vector<1x128xf32>
    %153 = vector.broadcast %152 : vector<1x128xf32> to vector<16x128xf32>
    %154 = arith.mulf %117, %153 : vector<16x128xf32>
    %155 = arith.addf %150, %154 : vector<16x128xf32>
    %c8_69 = arith.constant 8 : index
    %c0_70 = arith.constant 0 : index
    %c0_71 = arith.constant 0 : index
    %156 = vector.load %arg4[%c8_69, %c0_70, %c0_71] : memref<10x1x128xf32, #tpu.memory_space<vmem>>, vector<1x1x128xf32>
    %157 = vector.shape_cast %156 : vector<1x1x128xf32> to vector<1x128xf32>
    %158 = vector.broadcast %157 : vector<1x128xf32> to vector<16x128xf32>
    %159 = arith.mulf %118, %158 : vector<16x128xf32>
    %160 = arith.addf %155, %159 : vector<16x128xf32>
    %cst_72 = arith.constant dense<0.000000e+00> : vector<16x128xf32>
    %161 = tpu.matmul %3, %132, %cst_72 {dimension_numbers = #tpu.dot_dimension_numbers<[1], [0], [0], [1], [0, 0, 1, 1], [], []>} : vector<16x16xf32>, vector<16x128xf32>, vector<16x128xf32> -> vector<16x128xf32>
    %cst_73 = arith.constant dense<0.000000e+00> : vector<16x128xf32>
    %162 = tpu.matmul %5, %160, %cst_73 {dimension_numbers = #tpu.dot_dimension_numbers<[1], [0], [0], [1], [0, 0, 1, 1], [], []>} : vector<16x16xf32>, vector<16x128xf32>, vector<16x128xf32> -> vector<16x128xf32>
    %163 = arith.addf %161, %146 : vector<16x128xf32>
    %164 = arith.addf %163, %162 : vector<16x128xf32>
    %c9_74 = arith.constant 9 : index
    %c0_75 = arith.constant 0 : index
    %c0_76 = arith.constant 0 : index
    %165 = vector.load %arg4[%c9_74, %c0_75, %c0_76] : memref<10x1x128xf32, #tpu.memory_space<vmem>>, vector<1x1x128xf32>
    %166 = vector.shape_cast %165 : vector<1x1x128xf32> to vector<1x128xf32>
    %167 = vector.broadcast %166 : vector<1x128xf32> to vector<16x128xf32>
    %168 = arith.addf %164, %167 : vector<16x128xf32>
    %cst_77 = arith.constant 0.000000e+00 : f32
    %169 = vector.broadcast %cst_77 : f32 to vector<16x128xf32>
    %170 = arith.cmpf oge, %168, %169 : vector<16x128xf32>
    %cst_78 = arith.constant 4.000000e-01 : f32
    %171 = vector.broadcast %cst_78 : f32 to vector<16x128xf32>
    %172 = arith.mulf %171, %168 : vector<16x128xf32>
    %173 = arith.select %170, %168, %172 : vector<16x128xi1>, vector<16x128xf32>
    %c0_79 = arith.constant 0 : index
    %c0_80 = arith.constant 0 : index
    %c0_81 = arith.constant 0 : index
    %174 = vector.load %arg5[%c0_79, %c0_80, %c0_81] : memref<1x16x128xf32, #tpu.memory_space<vmem>>, vector<1x16x128xf32>
    %175 = vector.shape_cast %174 : vector<1x16x128xf32> to vector<16x128xf32>
    %176 = vector.shape_cast %173 : vector<16x128xf32> to vector<1x16x128xf32>
    tpu.vector_store %arg5[%c0_79, %c0_80, %c0_81], %176 {strides = array<i32>} : memref<1x16x128xf32, #tpu.memory_space<vmem>>, vector<1x16x128xf32>,
    return
  }
  func.func @transform_0(%arg0: i32) -> (i32, i32, i32) {
    %c0_i32 = arith.constant 0 : i32
    %c0_i32_0 = arith.constant 0 : i32
    %c0_i32_1 = arith.constant 0 : i32
    return %arg0, %c0_i32, %c0_i32_0 : i32, i32, i32
  }
  func.func @transform_1(%arg0: i32) -> (i32, i32, i32) {
    %c0_i32 = arith.constant 0 : i32
    %c0_i32_0 = arith.constant 0 : i32
    %c0_i32_1 = arith.constant 0 : i32
    %c0_i32_2 = arith.constant 0 : i32
    return %c0_i32, %c0_i32_0, %c0_i32_1 : i32, i32, i32
  }
  func.func @transform_2(%arg0: i32) -> (i32, i32, i32) {
    %c0_i32 = arith.constant 0 : i32
    %c0_i32_0 = arith.constant 0 : i32
    %c0_i32_1 = arith.constant 0 : i32
    %c0_i32_2 = arith.constant 0 : i32
    return %c0_i32, %c0_i32_0, %c0_i32_1 : i32, i32, i32
  }
  func.func @transform_3(%arg0: i32) -> (i32, i32, i32) {
    %c0_i32 = arith.constant 0 : i32
    %c0_i32_0 = arith.constant 0 : i32
    %c0_i32_1 = arith.constant 0 : i32
    %c0_i32_2 = arith.constant 0 : i32
    return %c0_i32, %c0_i32_0, %c0_i32_1 : i32, i32, i32
  }
  func.func @transform_4(%arg0: i32) -> (i32, i32, i32) {
    %c0_i32 = arith.constant 0 : i32
    %c0_i32_0 = arith.constant 0 : i32
    %c0_i32_1 = arith.constant 0 : i32
    return %arg0, %c0_i32, %c0_i32_0 : i32, i32, i32
  }
}

</mosaic_0001>

<bundles_post_ra>
// kernel: stft_upsample.1
= control target key start
LH: loop header
LB: loop body
LE: loop exit
PB: predicated region body
PF: predicated region fallthrough
CT: control target
= control target key end

     0   :  { %s1434_s15 = smov 0   ;;  %s1588_s0 = inlined_call_operand.vmem [shape: f32[2,16,8], index: 0, kind: input, shape index: {}]   ;;  %s1589_s1 = inlined_call_operand.vmem [shape: f32[2,16,16], index: 1, kind: input, shape index: {}]   ;;  %s1590_s2 = inlined_call_operand.vmem [shape: f32[10,1,32], index: 2, kind: input, shape index: {}]   ;;  %s1591_s3 = inlined_call_operand.vmem [shape: f32[10,1,128], index: 3, kind: input, shape index: {}]   ;;  %s1592_s4 = inlined_call_operand.vmem [shape: f32[2,16,128], index: 4, kind: output, shape index: {}]  }
   0x1 LB: > { %s1186_s16 = sadd.s32 4294967295, %s1403_s15   ;;  %p1190_p0 = scmp.ge.s32.totalorder %s1403_s15, 1  ;;  %s1403_s15 = sphi %s1434_s15, %s14_s15  }
   0x2   : > { %p162_p1 = scmp.lt.s32.totalorder %s1403_s15, 3 }
   0x4   : > { %p163_p2 = pnand %p1190_p0, %p162_p1 }
   0x5   : > { %v205_v0 = vlaneseq (!%p163_p2)  ;;  %p188_p3 = scmp.lt.s32.totalorder (!%p163_p2), %s1186_s16, 1  ;;  %vm216_vm0 = vcmask (!%p163_p2), 64512   ;;  %v1405_v14 = vmov (!%p163_p2), 1.0   ;;  %v1195_v15 = vld [vmem:[%s1589_s1 + $0x10] sm:$0xff] (!%p163_p2)  ;;  %vm565_vm10 = vcmask (!%p163_p2), 130048   ;;  %v1511_v63 = vld [vmem:[%s1589_s1 + $0x18] sm:$0xff] (!%p163_p2) }
   0x6   : > { %166 = sbr.rel (%p163_p2) target bundleno = 1048 (0x418), region = 36  ;;  %v1209_v16 = vld [vmem:[%s1590_s2] ss:$0 sm:$0xff] (!%p163_p2)  ;;  %v1215_v17 = vld [vmem:[%s1590_s2 + $0x3] ss:$0 sm:$0xff] (!%p163_p2)  ;;  %s1407_s26 = smov (!%p163_p2), 124  }
   0x7   : > { %v1442_v1 = vand.u32 (!%p163_p2), 127, %v205_v0  ;;  %v1444_v2 = vshrl.u32 (!%p163_p2), %v205_v0, 7  ;;  %v1221_v18 = vld [vmem:[%s1590_s2 + $0x6] ss:$0 sm:$0xff] (!%p163_p2)  ;;  %v1211_v19 = vld [vmem:[%s1590_s2 + $0x1] ss:$0 sm:$0xff] (!%p163_p2) }
   0x8   : > { %v1217_v21 = vld [vmem:[%s1590_s2 + $0x4] ss:$0 sm:$0xff] (!%p163_p2)  ;;  %v1223_v22 = vld [vmem:[%s1590_s2 + $0x7] ss:$0 sm:$0xff] (!%p163_p2)  ;;  %v1213_v29 = vld [vmem:[%s1590_s2 + $0x2] ss:$0 sm:$0xff] (!%p163_p2) }
   0x9   : > { %v209_v3 = vmul.u32 (!%p163_p2), 4, %v1444_v2  ;;  %v298_v4 = vadd.s32 (!%p163_p2), 1, %v1444_v2  ;;  %v381_v5 = vadd.s32 (!%p163_p2), 4294967295, %v1444_v2  ;;  %v1219_v30 = vld [vmem:[%s1590_s2 + $0x5] ss:$0 sm:$0xff] (!%p163_p2)  ;;  %s1408_s27 = smov (!%p163_p2), 4  }
   0xa   : > { %v1225_v36 = vld [vmem:[%s1590_s2 + $0x8] ss:$0 sm:$0xff] (!%p163_p2)  ;;  %v1516_v0 = vld [vmem:[%s1589_s1] sm:$0xff] (!%p163_p2)  ;;  %v1231_v11 = vld [vmem:[%s1590_s2 + $0x9] ss:$0 sm:$0xff] (!%p163_p2) }
   0xb   : > { %vm210_vm1 = vcmp.ge.s32.totalorder (!%p163_p2), %v1442_v1, %v209_v3  ;;  %v211_v6 = vadd.s32 (!%p163_p2), 4, %v209_v3  ;;  %v299_v8 = vmul.u32 (!%p163_p2), 4, %v298_v4  ;;  %v382_v9 = vmul.u32 (!%p163_p2), 4, %v381_v5  ;;  %v1525_v3 = vld [vmem:[%s1589_s1 + $0x8] sm:$0xff] (!%p163_p2) }
   0xc   : > { %v746_v4 = vadd.s32 (!%p163_p2), 8, %v1444_v2 }
   0xd   : > { %s1596_s16 = smov (!%p188_p3, %s1186_s16), 1  ;;  %vm212_vm2 = vcmp.lt.s32.totalorder %v1442_v1, %v211_v6  ;;  %vm300_vm3 = vcmp.ge.s32.totalorder %v1442_v1, %v299_v8  ;;  %v301_v10 = vadd.s32 4, %v299_v8  ;;  %vm383_vm5 = vcmp.ge.s32.totalorder %v1442_v1, %v382_v9 }
   0xe   : > { %s1266_s17 = sshll.u32 %s1596_s16, 4  ;;  %vm1462_vm4 = vmand %vm210_vm1, %vm212_vm2  ;;  %v384_v13 = vadd.s32 4, %v382_v9  ;;  %v749_v5 = vmul.u32 4, %v746_v4  ;;  %v748_v8 = vadd.s32 24, %v1444_v2 }
   0xf   : > { %s192_s20 = scalar_lea.vmem %s1588_s0, %s1266_s17  ;;  %1299 = vmatprep.subr.msk.mxu0 %vm1462_vm4, %v1405_v14  ;;  %vm302_vm6 = vcmp.lt.s32.totalorder %v1442_v1, %v301_v10 }
  0x10   : > { %v198_v7 = vld [vmem:[%s192_s20] sm:$0xff]  ;;  %v199_v12 = vld [vmem:[%s192_s20 + $0x8] sm:$0xff]  ;;  %1300 = vmatpush3.msk.msra.mxu0 %vm1462_vm4, %v1405_v14  ;;  %vm303_vm7 = vmand %vm300_vm3, %vm302_vm6  ;;  %vm385_vm8 = vcmp.lt.s32.totalorder %v1442_v1, %v384_v13  ;;  %v755_v6 = vadd.s32 4, %v749_v5  ;;  %vm752_vm11 = vcmp.ge.s32.totalorder %v1442_v1, %v749_v5  ;;  %v751_v10 = vmul.u32 4, %v748_v8 }
  0x11   : > { %1301 = vmatprep.mubr.msk.f32.mxu0 %vm216_vm0, %v198_v7  ;;  %1306 = vmatprep.mubr.msk.f32.mxu1 %vm216_vm0, %v198_v7  ;;  %vm386_vm9 = vmand %vm383_vm5, %vm385_vm8  ;;  %vm770_vm8 = vcmask 261120  }
  0x12   : > { %1302 = vmatmul.mubr.msk.f32.vlgmr.msra.gmra.mrb[0].mxu0 %vm216_vm0, %v199_v12  ;;  %1304 = vmatprep.subr.msk.mxu1 %vm303_vm7, %v1405_v14  ;;  %vm758_vm12 = vcmp.lt.s32.totalorder %v1442_v1, %v755_v6  ;;  %v757_v13 = vadd.s32 4, %v751_v10 }
  0x13   : > { %1309 = vmatprep.subr.msk.mxu0 %vm386_vm9, %v1405_v14  ;;  %1305 = vmatpush3.msk.msra.mxu1 %vm303_vm7, %v1405_v14  ;;  %vm761_vm13 = vmand %vm752_vm11, %vm758_vm12 }
  0x14   : > { %1310 = vmatpush3.msk.msra.mxu0 %vm386_vm9, %v1405_v14  ;;  %1307 = vmatmul.mubr.msk.f32.vlgmr.msra.gmra.mrb[0].mxu1 %vm216_vm0, %v199_v12  ;;  %vm1361_vm14 = vmpackc.low %vm761_vm13, %vm1462_vm4  ;;  %v1406_v14 = vmov 1.0|1.0   ;;  %vm760_vm2 = vcmp.lt.s32.totalorder %v1442_v1, %v757_v13  ;;  %v1263_v13 = vld [vmem:[%s1591_s3 + $0x9] ss:$0 sm:$0xff] }
  0x15   : > { %1311 = vmatprep.mubr.msk.f32.mxu0 %vm216_vm0, %v198_v7  ;;  %1318 = vmatprep.mubr.msk.f32.mxu1 %vm565_vm10, %v1195_v15  ;;  %v747_v7 = vadd.s32 16, %v1444_v2 }
  0x16   : > { %1312 = vmatmul.mubr.msk.f32.vlgmr.msra.gmra.mrb[2].mxu0 %vm216_vm0, %v199_v12  ;;  %1362 = vmatprep.subr.msk.bf16.mxu0 %vm1361_vm14, %v1406_v14  ;;  %vm754_vm0 = vcmp.ge.s32.totalorder %v1442_v1, %v751_v10 }
  0x17   : > { %v750_v9 = vmul.u32 4, %v747_v7  ;;  %1364 = vmatpush3.bf16.msk.msra.mxu0 %vm1361_vm14, %v1406_v14  ;;  %vm763_vm5 = vmand %vm754_vm0, %vm760_vm2 }
  0x19   : > { %v756_v12 = vadd.s32 4, %v750_v9  ;;  %vm753_vm15 = vcmp.ge.s32.totalorder %v1442_v1, %v750_v9 }
  0x1b   : > { %vm759_vm1 = vcmp.lt.s32.totalorder %v1442_v1, %v756_v12 }
  0x1c   : > { %vm762_vm3 = vmand %vm753_vm15, %vm759_vm1 }
  0x1d   : > { %vm1365_vm6 = vmpackc.low %vm763_vm5, %vm762_vm3 }
  0x1e   : > { %1366 = vmatprep.subr.msk.bf16.mxu0 %vm1365_vm6, %v1406_v14 }
  0x1f   : > { %1368 = vmatpush3.bf16.msk.msra.mxu0 %vm1365_vm6, %v1406_v14 }
  0xe5   : > { %v1303_v20 = vpop.f32.mrb[0].mxu0 }
  0xe6   : > { %v289_v23 = vpop.f32.mrb[1].mxu0  ;;  %v472_v24 = vmul.f32 %v1303_v20, %v1209_v16  ;;  %v506_v25 = vmul.f32 %v1303_v20, %v1215_v17  ;;  %v540_v26 = vmul.f32 %v1303_v20, %v1221_v18 }
  0xe7   : > { %v471_v27 = vmul.f32 %v1209_v16, %v289_v23  ;;  %v1308_v28 = vpop.f32.mrb[0].mxu1  ;;  %v505_v31 = vmul.f32 %v1215_v17, %v289_v23  ;;  %v539_v37 = vmul.f32 %v1221_v18, %v289_v23 }
  0xe8   : > { %v482_v32 = vmul.f32 %v1308_v28, %v1211_v19  ;;  %v516_v33 = vmul.f32 %v1308_v28, %v1217_v21  ;;  %v550_v34 = vmul.f32 %v1308_v28, %v1223_v22  ;;  %v372_v35 = vpop.f32.mrb[1].mxu1  ;;  %v1255_v28 = vld [vmem:[%s1591_s3 + $0x7] ss:$0 sm:$0xff] }
  0xe9   : > { %v481_v38 = vmul.f32 %v1211_v19, %v372_v35  ;;  %v515_v39 = vmul.f32 %v1217_v21, %v372_v35  ;;  %v549_v40 = vmul.f32 %v1223_v22, %v372_v35  ;;  %v1313_v41 = vpop.f32.mrb[2].mxu0  ;;  %v1251_v35 = vld [vmem:[%s1591_s3 + $0x5] ss:$0 sm:$0xff] }
  0xea   : > { %v484_v42 = vadd.f32 %v482_v32, %v472_v24  ;;  %v552_v43 = vadd.f32 %v550_v34, %v540_v26  ;;  %v494_v44 = vmul.f32 %v1313_v41, %v1213_v29  ;;  %v528_v45 = vmul.f32 %v1313_v41, %v1219_v30  ;;  %v455_v46 = vpop.f32.mrb[3].mxu0  ;;  %v1247_v26 = vld [vmem:[%s1591_s3 + $0x3] ss:$0 sm:$0xff]  ;;  %v1253_v32 = vld [vmem:[%s1591_s3 + $0x6] ss:$0 sm:$0xff] }
  0xeb   : > { %v483_v47 = vadd.f32 %v481_v38, %v471_v27  ;;  %v551_v48 = vadd.f32 %v549_v40, %v539_v37  ;;  %v562_v49 = vmul.f32 %v1313_v41, %v1225_v36  ;;  %v493_v50 = vmul.f32 %v1213_v29, %v455_v46  ;;  %v1249_v27 = vld [vmem:[%s1591_s3 + $0x4] ss:$0 sm:$0xff]  ;;  %v1241_v29 = vld [vmem:[%s1591_s3] ss:$0 sm:$0xff]  ;;  %v1257_v41 = vld [vmem:[%s1591_s3 + $0x8] ss:$0 sm:$0xff] }
  0xec   : > { %v496_v51 = vadd.f32 %v494_v44, %v484_v42  ;;  %v527_v52 = vmul.f32 %v1219_v30, %v455_v46  ;;  %v561_v53 = vmul.f32 %v1225_v36, %v455_v46  ;;  %v518_v54 = vadd.f32 %v516_v33, %v506_v25  ;;  %v1243_v25 = vld [vmem:[%s1591_s3 + $0x1] ss:$0 sm:$0xff] }
  0xed   : > { %v564_v55 = vadd.f32 %v562_v49, %v552_v43  ;;  %v495_v56 = vadd.f32 %v493_v50, %v483_v47  ;;  %v517_v57 = vadd.f32 %v515_v39, %v505_v31  ;;  %v1245_v39 = vld [vmem:[%s1591_s3 + $0x2] ss:$0 sm:$0xff] }
  0xee   : > { %v563_v58 = vadd.f32 %v561_v53, %v551_v48  ;;  %v530_v59 = vadd.f32 %v528_v45, %v518_v54 }
  0xef   : > { %v1357_v60 = vpack.c.bf16 %v496_v51, %v495_v56  ;;  %v529_v61 = vadd.f32 %v527_v52, %v517_v57 }
  0xf0   : > { %v1353_v62 = vpack.c.bf16 %v564_v55, %v563_v58 }
  0xf2   : > { %1354 = vmatprep.subr.bf16.mxu1 %v1353_v62 }
  0xf3   : > { %1356 = vmatpush3.bf16.msra.mxu1 %v1353_v62 }
  0xf4   : > { %1358 = vmatprep.subr.bf16.mxu1 %v1357_v60 }
  0xf6   : > { %1319 = vmatmul.mubr.msk.f32.vlgmr.msra.gmra.mrb[2].mxu1 %vm565_vm10, %v1511_v63 }
  0xf7   : > { %1360 = vmatpush3.bf16.msra.mxu1 %v1357_v60  ;;  %1325 = vmatprep.mubr.msk.f32.mxu1 %vm565_vm10, %v1516_v0 }
  0xfe   : > { %1326 = vmatmul.mubr.msk.f32.vlgmr.msra.gmra.mrb[2].mxu1 %vm565_vm10, %v1525_v3 }
  0xff   : > { %1343 = vmatprep.mubr.msk.f32.mxu1 %vm565_vm10, %v1195_v15 }
 0x1d1   : > { %v1327_v2 = vpop.f32.mrb[2].mxu1 }
 0x1d2   : > { %v725_v15 = vadd.f32 %v1327_v2, %v530_v59  ;;  %v719_v16 = vpop.f32.mrb[3].mxu1 }
 0x1d3   : > { %v720_v17 = vadd.f32 %v719_v16, %v529_v61 }
 0x1d4   : > { %v739_v18 = vadd.f32 %v1231_v11, %v725_v15 }
 0x1d5   : > { %v738_v19 = vadd.f32 %v1231_v11, %v720_v17 }
 0x1d6   : > { %v743_v20 = vmul.f32 0.4, %v739_v18  ;;  %vm741_vm4 = vcmp.ge.f32.partialorder %v739_v18, 0.0 }
 0x1d7   : > { %v742_v21 = vmul.f32 0.4, %v738_v19  ;;  %vm740_vm7 = vcmp.ge.f32.partialorder %v738_v19, 0.0 }
 0x1d8   : > { %v745_v22 = vsel %vm741_vm4, %v739_v18, %v743_v20 }
 0x1d9   : > { %v744_v1 = vsel %vm740_vm7, %v738_v19, %v742_v21 }
 0x1da   : > { %1336 = vmatprep.mubr.msk.f32.mxu0 %vm770_vm8, %v744_v1 }
 0x1db   : > { %1337 = vmatmul.mubr.msk.f32.vlgmr.msra.gmra.mrb[4].mxu0 %vm770_vm8, %v745_v22 }
 0x2ae   : > { %v1338_v23 = vpop.f32.mrb[4].mxu0 }
 0x2af   : > { %v843_v24 = vpop.f32.mrb[5].mxu0  ;;  %v868_v43 = vmul.f32 %v1338_v23, %v1241_v29  ;;  %v902_v44 = vmul.f32 %v1338_v23, %v1247_v26  ;;  %v936_v48 = vmul.f32 %v1338_v23, %v1253_v32 }
 0x2b0   : > { %856 = vrot.lane.b32.xlu1 %v843_v24, %s1407_s26  ;;  %852 = vrot.lane.b32.xlu0 %v843_v24, %s1408_s27  ;;  %v901_v34 = vmul.f32 %v1247_v26, %v843_v24  ;;  %v867_v38 = vmul.f32 %v1241_v29, %v843_v24  ;;  %v935_v40 = vmul.f32 %v1253_v32, %v843_v24 }
 0x2b4   : > { %858 = vrot.lane.b32.xlu1 %v1338_v23, %s1407_s26  ;;  %854 = vrot.lane.b32.xlu0 %v1338_v23, %s1408_s27  ;;  %s197_s27 = scalar_lea.vmem %s1592_s4, %s1266_s17 }
 0x322   : > { %v857_v30 = vpop.permute.xlu1 %856  ;;  %v853_v31 = vpop.permute.xlu0 %852 }
 0x323   : > { %v877_v33 = vmul.f32 %v1243_v25, %v853_v31  ;;  %v911_v36 = vmul.f32 %v1249_v27, %v853_v31  ;;  %v945_v37 = vmul.f32 %v1255_v28, %v853_v31  ;;  %v923_v47 = vmul.f32 %v1251_v35, %v857_v30 }
 0x324   : > { %v889_v51 = vmul.f32 %v1245_v39, %v857_v30  ;;  %v957_v55 = vmul.f32 %v1257_v41, %v857_v30 }
 0x325   : > { %v913_v46 = vadd.f32 %v911_v36, %v901_v34  ;;  %v879_v50 = vadd.f32 %v877_v33, %v867_v38  ;;  %v947_v54 = vadd.f32 %v945_v37, %v935_v40 }
 0x326   : > { %v859_v42 = vpop.permute.xlu1 %858  ;;  %v855_v45 = vpop.permute.xlu0 %854 }
 0x327   : > { %v878_v49 = vmul.f32 %v1243_v25, %v855_v45  ;;  %v912_v52 = vmul.f32 %v1249_v27, %v855_v45  ;;  %v946_v53 = vmul.f32 %v1255_v28, %v855_v45  ;;  %v890_v56 = vmul.f32 %v1245_v39, %v859_v42 }
 0x328   : > { %v925_v58 = vadd.f32 %v923_v47, %v913_v46  ;;  %v924_v59 = vmul.f32 %v1251_v35, %v859_v42  ;;  %v958_v60 = vmul.f32 %v1257_v41, %v859_v42  ;;  %v891_v5 = vadd.f32 %v889_v51, %v879_v50 }
 0x329   : > { %v880_v57 = vadd.f32 %v878_v49, %v868_v43  ;;  %v914_v61 = vadd.f32 %v912_v52, %v902_v44  ;;  %v948_v62 = vadd.f32 %v946_v53, %v936_v48  ;;  %v959_v7 = vadd.f32 %v957_v55, %v947_v54 }
 0x32b   : > { %v892_v4 = vadd.f32 %v890_v56, %v880_v57  ;;  %v960_v6 = vadd.f32 %v958_v60, %v948_v62  ;;  %v926_v8 = vadd.f32 %v924_v59, %v914_v61 }
 0x32d   : > { %v1373_v9 = vpack.c.bf16 %v892_v4, %v891_v5  ;;  %v1369_v10 = vpack.c.bf16 %v960_v6, %v959_v7 }
 0x32f   : > { %1370 = vmatprep.subr.bf16.mxu1 %v1369_v10 }
 0x330   : > { %1372 = vmatpush3.bf16.msra.mxu1 %v1369_v10 }
 0x331   : > { %1374 = vmatprep.subr.bf16.mxu1 %v1373_v9 }
 0x333   : > { %1344 = vmatmul.mubr.msk.f32.vlgmr.msra.gmra.mrb[4].mxu1 %vm565_vm10, %v1511_v63 }
 0x334   : > { %1376 = vmatpush3.bf16.msra.mxu1 %v1373_v9  ;;  %1350 = vmatprep.mubr.msk.f32.mxu1 %vm565_vm10, %v1516_v0 }
 0x33b   : > { %1351 = vmatmul.mubr.msk.f32.vlgmr.msra.gmra.mrb[4].mxu1 %vm565_vm10, %v1525_v3 }
 0x40e   : > { %v1352_v12 = vpop.f32.mrb[4].mxu1 }
 0x40f   : > { %v1108_v14 = vadd.f32 %v1352_v12, %v926_v8  ;;  %v1102_v2 = vpop.f32.mrb[5].mxu1 }
 0x410   : > { %v1103_v11 = vadd.f32 %v1102_v2, %v925_v58 }
 0x411   : > { %v1122_v15 = vadd.f32 %v1263_v13, %v1108_v14 }
 0x412   : > { %v1121_v16 = vadd.f32 %v1263_v13, %v1103_v11 }
 0x413   : > { %vm1124_vm9 = vcmp.ge.f32.partialorder %v1122_v15, 0.0  ;;  %v1126_v63 = vmul.f32 0.4, %v1122_v15 }
 0x414   : > { %vm1123_vm11 = vcmp.ge.f32.partialorder %v1121_v16, 0.0  ;;  %v1125_v0 = vmul.f32 0.4, %v1121_v16 }
 0x415   : > { %v1128_v3 = vsel %vm1124_vm9, %v1122_v15, %v1126_v63 }
 0x416   : > { %1130 = vst [vmem:[%s197_s27 + $0x8] sm:$0xff] %v1128_v3  ;;  %v1127_v17 = vsel %vm1123_vm11, %v1121_v16, %v1125_v0 }
 0x417   : > { %1129 = vst [vmem:[%s197_s27] sm:$0xff] %v1127_v17 }
 0x418 PF: > { %s14_s15 = sadd.s32 1, %s1403_s15  }
 0x419   : > { %p11_p4 = scmp.ge.s32.totalorder %s14_s15, 4  }
 0x41b   :  { %13 = sbr.rel (!%p11_p4) target bundleno = 1 (0x1), region = 85 }

</bundles_post_ra>
